<compile_context>
chip_gen: v7x
topology: tpu7x:2x2x1
jax: 0.10.0
libtpu: 0.0.40
codegen_flags: <defaults>
</compile_context>

<pallas_src>
import jax
import jax.numpy as jnp
from jax.experimental import pallas as pl
from jax.experimental.pallas import tpu as pltpu


def dummynet_kernel(x_ref, w1_ref, b1_ref, w2_ref, b2_ref, o_ref):
    # Layer 1: Linear(100->128) + ReLU. MXU matmul, f32 accumulation; the
    # K=100 contraction is padded to MXU width inside VMEM by Mosaic for free.
    h = jnp.dot(x_ref[...], w1_ref[...],
                preferred_element_type=jnp.float32,
                precision=jax.lax.Precision.HIGHEST)
    h = jnp.maximum(h + b1_ref[...], 0.0)          # (tb,128)+(1,128) broadcast; VPU
    # Layer 2: Linear(128->10). Narrow (tb,10) result stored directly (masked
    # vst); saves ~12.8x output HBM bytes vs a 128-wide padded slab.
    y = jnp.dot(h, w2_ref[...],
                preferred_element_type=jnp.float32,
                precision=jax.lax.Precision.HIGHEST)
    o_ref[...] = (y + b2_ref[...]).astype(o_ref.dtype)


def _round_up(n, m):
    return -(-n // m) * m


def dummynet_forward(x, w1, b1, w2, b2, *, tb=4096):
    """DummyNet forward. x:(B,100) w1:(100,128) b1:(1,128) w2:(128,10) b2:(1,10)."""
    B, K = x.shape
    Hd = w1.shape[1]            # 128
    N = w2.shape[1]             # 10
    dtype = x.dtype

    cost = pl.CostEstimate(
        flops=2 * B * (K * Hd + Hd * N),
        transcendentals=0,
        bytes_accessed=4 * (B * K + K * Hd + Hd + Hd * N + N + B * N),
    )

    if B <= tb:
        # Small/moderate batch: single grid-less invocation, every operand
        # resident in VMEM, no padding or slicing anywhere.
        return pl.pallas_call(
            dummynet_kernel,
            out_shape=jax.ShapeDtypeStruct((B, N), dtype),
            in_specs=[pl.BlockSpec(memory_space=pltpu.MemorySpace.VMEM)] * 5,
            out_specs=pl.BlockSpec(memory_space=pltpu.MemorySpace.VMEM),
            cost_estimate=cost,
        )(x, w1, b1, w2, b2)

    # Large batch: tile the batch dim. Activation/output blocks walk the batch
    # axis (double-buffered HBM<->VMEM); the ~56 KB of weights/biases use the
    # same block every step and stay VMEM-resident. Tile capped at ceil(B/2)
    # (rounded to 8) so there are always >= 2 grid steps; batch axis marked
    # "parallel" so v7x shards the steps across its 2 TensorCores. cdiv grid
    # with a masked ragged last block avoids any batch padding.
    tb_eff = min(tb, _round_up(pl.cdiv(B, 2), 8))
    nsteps = pl.cdiv(B, tb_eff)

    weight_bytes = 4 * (K * Hd + Hd + Hd * N + N)
    block_bytes = 4 * tb_eff * (K + N)            # one x tile + one out tile
    vmem_limit = int(min(60 << 20,                # stay under v7x's 64 MiB/TC
                         max(32 << 20, 4 * block_bytes + 4 * weight_bytes + (4 << 20))))

    return pl.pallas_call(
        dummynet_kernel,
        out_shape=jax.ShapeDtypeStruct((B, N), dtype),
        grid=(nsteps,),
        in_specs=[
            pl.BlockSpec((tb_eff, K), lambda i: (i, 0)),   # x tile walks the batch
            pl.BlockSpec((K, Hd), lambda i: (0, 0)),       # w1 resident
            pl.BlockSpec((1, Hd), lambda i: (0, 0)),       # b1 resident
            pl.BlockSpec((Hd, N), lambda i: (0, 0)),       # w2 resident
            pl.BlockSpec((1, N), lambda i: (0, 0)),        # b2 resident
        ],
        out_specs=pl.BlockSpec((tb_eff, N), lambda i: (i, 0)),
        compiler_params=pltpu.CompilerParams(
            dimension_semantics=("parallel",),
            vmem_limit_bytes=vmem_limit,
        ),
        cost_estimate=cost,
    )(x, w1, b1, w2, b2)


def init_params(key):
    # Deterministic init mimicking nn.Linear defaults (uniform +/- 1/sqrt(fan_in)).
    k1, k2, k3, k4 = jax.random.split(key, 4)
    bound1 = 1.0 / jnp.sqrt(100.0)
    bound2 = 1.0 / jnp.sqrt(128.0)
    w1 = jax.random.uniform(k1, (100, 128), jnp.float32, -bound1, bound1)
    b1 = jax.random.uniform(k2, (1, 128),   jnp.float32, -bound1, bound1)
    w2 = jax.random.uniform(k3, (128, 10),  jnp.float32, -bound2, bound2)
    b2 = jax.random.uniform(k4, (1, 10),    jnp.float32, -bound2, bound2)
    return w1, b1, w2, b2


if __name__ == "__main__":
    key = jax.random.PRNGKey(0)
    kx, kx2, kp = jax.random.split(key, 3)
    w1, b1, w2, b2 = init_params(kp)

    fwd = jax.jit(dummynet_forward, static_argnames=("tb",))

    def ref_fwd(x):
        h = jnp.maximum(
            jnp.dot(x, w1, precision=jax.lax.Precision.HIGHEST) + b1, 0.0)
        return jnp.dot(h, w2, precision=jax.lax.Precision.HIGHEST) + b2

    # Small batch -> grid-less path (all operands resident in VMEM, no padding).
    B = 4
    x = jax.random.normal(kx, (B, 100), jnp.float32)
    out = jax.block_until_ready(fwd(x, w1, b1, w2, b2))
    assert out.shape == (B, 10)
    assert jnp.allclose(out, ref_fwd(x), atol=1e-5, rtol=1e-5)

    # Ragged batch with a small tile -> exercises the batch-tiled grid path
    # (>=2 steps, resident weights, masked ragged last block, narrow output).
    B2 = 1000
    x2 = jax.random.normal(kx2, (B2, 100), jnp.float32)
    out2 = jax.block_until_ready(fwd(x2, w1, b1, w2, b2, tb=512))
    assert out2.shape == (B2, 10)
    assert jnp.allclose(out2, ref_fwd(x2), atol=1e-5, rtol=1e-5)

    print("KERNEL_OK")
</pallas_src>

<mosaic_0001>
module attributes {stable_mosaic.version = 11 : i64} {
  func.func @dummynet_kernel(%arg0: memref<4x100xf32, #tpu.memory_space<vmem>>, %arg1: memref<100x128xf32, #tpu.memory_space<vmem>>, %arg2: memref<1x128xf32, #tpu.memory_space<vmem>>, %arg3: memref<128x10xf32, #tpu.memory_space<vmem>>, %arg4: memref<1x10xf32, #tpu.memory_space<vmem>>, %arg5: memref<4x10xf32, #tpu.memory_space<vmem>>) attributes {dimension_semantics = [], scalar_prefetch = 0 : i64, scratch_operands = 0 : i64, tpu.core_type = #tpu.core_type<tc>} {
    %c0 = arith.constant 0 : index
    %c0_0 = arith.constant 0 : index
    %0 = vector.load %arg0[%c0, %c0_0] : memref<4x100xf32, #tpu.memory_space<vmem>>, vector<4x100xf32>
    %c0_1 = arith.constant 0 : index
    %c0_2 = arith.constant 0 : index
    %1 = vector.load %arg1[%c0_1, %c0_2] : memref<100x128xf32, #tpu.memory_space<vmem>>, vector<100x128xf32>
    %cst = arith.constant dense<0.000000e+00> : vector<4x128xf32>
    %2 = tpu.matmul %0, %1, %cst {dimension_numbers = #tpu.dot_dimension_numbers<[1], [0], [0], [1], [0, 0, 1, 1], [], []>, precision = #tpu.contract_precision<fp32>} : vector<4x100xf32>, vector<100x128xf32>, vector<4x128xf32> -> vector<4x128xf32>
    %c0_3 = arith.constant 0 : index
    %c0_4 = arith.constant 0 : index
    %3 = vector.load %arg2[%c0_3, %c0_4] : memref<1x128xf32, #tpu.memory_space<vmem>>, vector<1x128xf32>
    %4 = vector.broadcast %3 : vector<1x128xf32> to vector<4x128xf32>
    %5 = arith.addf %2, %4 : vector<4x128xf32>
    %cst_5 = arith.constant 0.000000e+00 : f32
    %6 = vector.broadcast %cst_5 : f32 to vector<4x128xf32>
    %7 = arith.maximumf %5, %6 : vector<4x128xf32>
    %c0_6 = arith.constant 0 : index
    %c0_7 = arith.constant 0 : index
    %8 = vector.load %arg3[%c0_6, %c0_7] : memref<128x10xf32, #tpu.memory_space<vmem>>, vector<128x10xf32>
    %cst_8 = arith.constant dense<0.000000e+00> : vector<4x10xf32>
    %9 = tpu.matmul %7, %8, %cst_8 {dimension_numbers = #tpu.dot_dimension_numbers<[1], [0], [0], [1], [0, 0, 1, 1], [], []>, precision = #tpu.contract_precision<fp32>} : vector<4x128xf32>, vector<128x10xf32>, vector<4x10xf32> -> vector<4x10xf32>
    %c0_9 = arith.constant 0 : index
    %c0_10 = arith.constant 0 : index
    %10 = vector.load %arg4[%c0_9, %c0_10] : memref<1x10xf32, #tpu.memory_space<vmem>>, vector<1x10xf32>
    %11 = vector.broadcast %10 : vector<1x10xf32> to vector<4x10xf32>
    %12 = arith.addf %9, %11 : vector<4x10xf32>
    %c0_11 = arith.constant 0 : index
    %c0_12 = arith.constant 0 : index
    %13 = vector.load %arg5[%c0_11, %c0_12] : memref<4x10xf32, #tpu.memory_space<vmem>>, vector<4x10xf32>
    tpu.vector_store %arg5[%c0_11, %c0_12], %12 {strides = array<i32>} : memref<4x10xf32, #tpu.memory_space<vmem>>, vector<4x10xf32>,
    return
  }
}

</mosaic_0001>

<bundles_post_ra>
// kernel: dummynet_forward.1
= control target key start
LH: loop header
LB: loop body
LE: loop exit
PB: predicated region body
PF: predicated region fallthrough
CT: control target
= control target key end

     0   :  { %v2205_v3 = vmov 0.0|0.0   ;;  %s2949_s0 = inlined_call_operand.vmem [shape: f32[4,100], index: 0, kind: input, shape index: {}]   ;;  %s2950_s1 = inlined_call_operand.vmem [shape: f32[100,128], index: 1, kind: input, shape index: {}]   ;;  %s2951_s2 = inlined_call_operand.vmem [shape: f32[1,128], index: 2, kind: input, shape index: {}]   ;;  %s2952_s3 = inlined_call_operand.vmem [shape: f32[128,10], index: 3, kind: input, shape index: {}]   ;;  %s2953_s4 = inlined_call_operand.vmem [shape: f32[1,10], index: 4, kind: input, shape index: {}]   ;;  %s2954_s5 = inlined_call_operand.hbm [shape: f32[4,10], index: 5, kind: output, shape index: {}]  }
   0x1   :  { %v2242_v0 = vld [vmem:[%s2950_s1] sm:$0xff]  ;;  %v2247_v1 = vld [vmem:[%s2950_s1 + $0x8] sm:$0xff]  ;;  %v2252_v2 = vld [vmem:[%s2950_s1 + $0x10] sm:$0xff]  ;;  %1923 = vmatprep.subr.bf16.mxu0 %v2205_v3  ;;  %1905 = vmatprep.subr.bf16.mxu1 %v2205_v3 }
   0x2   :  { %v51_v4 = vand.u32 4294901760, %v2242_v0  ;;  %v54_v5 = vand.u32 4294901760, %v2247_v1  ;;  %v2260_v6 = vld [vmem:[%s2950_s1 + $0x18] sm:$0xff]  ;;  %v57_v7 = vand.u32 4294901760, %v2252_v2  ;;  %v2266_v8 = vld [vmem:[%s2950_s1 + $0x20] sm:$0xff]  ;;  %v2271_v9 = vld [vmem:[%s2950_s1 + $0x28] sm:$0xff] }
   0x3   :  { %v60_v10 = vand.u32 4294901760, %v2260_v6  ;;  %v63_v11 = vand.u32 4294901760, %v2266_v8  ;;  %v66_v12 = vand.u32 4294901760, %v2271_v9  ;;  %v2280_v13 = vld [vmem:[%s2950_s1 + $0x30] sm:$0xff]  ;;  %v2285_v14 = vld [vmem:[%s2950_s1 + $0x38] sm:$0xff] }
   0x4   :  { %v2290_v15 = vsub.f32 %v2242_v0, %v51_v4  ;;  %v2295_v16 = vsub.f32 %v2247_v1, %v54_v5  ;;  %v2300_v17 = vsub.f32 %v2252_v2, %v57_v7  ;;  %v69_v18 = vand.u32 4294901760, %v2280_v13 }
   0x5   :  { %v2306_v19 = vsub.f32 %v2260_v6, %v60_v10  ;;  %v2311_v20 = vsub.f32 %v2266_v8, %v63_v11  ;;  %v2316_v21 = vsub.f32 %v2271_v9, %v66_v12  ;;  %v72_v22 = vand.u32 4294901760, %v2285_v14 }
   0x6   :  { %v141_v23 = vand.u32 4294901760, %v2290_v15  ;;  %v148_v24 = vand.u32 4294901760, %v2295_v16  ;;  %v155_v25 = vand.u32 4294901760, %v2300_v17  ;;  %v2325_v26 = vsub.f32 %v2280_v13, %v69_v18 }
   0x7   :  { %10 = vsyncpa [#allocation3], 0  ;;  %v162_v27 = vand.u32 4294901760, %v2306_v19  ;;  %v169_v28 = vand.u32 4294901760, %v2311_v20  ;;  %v176_v29 = vand.u32 4294901760, %v2316_v21  ;;  %v2333_v30 = vsub.f32 %v2285_v14, %v72_v22  ;;  %v2358_v39 = vld [vmem:[%s2950_s1 + $0x40] sm:$0xff] }
   0x8   :  { %v142_v31 = vsub.f32 %v2290_v15, %v141_v23  ;;  %v149_v32 = vsub.f32 %v2295_v16, %v148_v24  ;;  %v156_v33 = vsub.f32 %v2300_v17, %v155_v25  ;;  %v183_v34 = vand.u32 4294901760, %v2325_v26  ;;  %v2363_v40 = vld [vmem:[%s2950_s1 + $0x48] sm:$0xff]  ;;  %v2368_v44 = vld [vmem:[%s2950_s1 + $0x50] sm:$0xff]  ;;  %v2376_v47 = vld [vmem:[%s2950_s1 + $0x58] sm:$0xff]  ;;  %s2208_s26 = smov [#allocation2]  }
   0x9   :  { %v163_v35 = vsub.f32 %v2306_v19, %v162_v27  ;;  %v170_v36 = vsub.f32 %v2311_v20, %v169_v28  ;;  %v177_v37 = vsub.f32 %v2316_v21, %v176_v29  ;;  %v190_v38 = vand.u32 4294901760, %v2333_v30  ;;  %v34_v48 = vld [vmem:[%s2950_s1 + $0x60] sm:$0xf]  ;;  %v654_v0 = vld [vmem:[%s2952_s3 + $0x8] sm:$0xff]  ;;  %v656_v2 = vld [vmem:[%s2952_s3 + $0x18] sm:$0xff]  ;;  %s1325_s27 = sshll.u32 %s2208_s26, 4  ;;  %s1326_s27 = int_to_ptr.vmem [resolvable:$true] %s1325_s27 }
   0xa   :  { %v143_v41 = vand.u32 4294901760, %v142_v31  ;;  %v150_v42 = vand.u32 4294901760, %v149_v32  ;;  %v157_v43 = vand.u32 4294901760, %v156_v33  ;;  %v184_v46 = vsub.f32 %v2325_v26, %v183_v34  ;;  %v658_v8 = vld [vmem:[%s2952_s3 + $0x28] sm:$0xff]  ;;  %s2181_s28 = scalar_lea.vmem %s1326_s27, 64  ;;  %p2186_p1 = scmp.lt.s32.totalorder %s1326_s27, %s1326_s27 }
   0xb   :  { %v164_v45 = vand.u32 4294901760, %v163_v35  ;;  %vm46_vm0 = vcmask 1043456   ;;  %v171_v50 = vand.u32 4294901760, %v170_v36  ;;  %v2958_v51 = vand.u32 4294901760, %v2358_v39  ;;  %p2182_p0 = scmp.ne.s32.totalorder %s1326_s27, %s2181_s28  ;;  %p2187_p2 = scmp.lt.s32.totalorder %s2181_s28, %s2181_s28 }
   0xc   :  { %v1924_v49 = vpack.c.bf16 %v150_v42, %v143_v41  ;;  %v2957_v52 = vand.u32 4294901760, %v2363_v40  ;;  %v178_v54 = vand.u32 4294901760, %v177_v37  ;;  %v191_v55 = vsub.f32 %v2333_v30, %v190_v38 }
   0xd   :  { %v1927_v53 = vpack.c.bf16 %v164_v45, %v157_v43  ;;  %v2956_v56 = vand.u32 4294901760, %v2368_v44  ;;  %v2390_v57 = vsub.f32 %v2358_v39, %v2958_v51  ;;  %v2955_v59 = vand.u32 4294901760, %v2376_v47  ;;  %p2188_p3 = por %p2187_p2, %p2186_p1 }
   0xe   :  { %1925 = vmatpush3.bf16.msra.mxu0 %v1924_v49  ;;  %v2395_v58 = vsub.f32 %v2363_v40, %v2957_v52  ;;  %v48_v60 = vsel %vm46_vm0, %v34_v48, 0  ;;  %vm2206_vm1 = vmmov 0   ;;  %v2207_v33 = vmov 0.0  }
   0xf   :  { %1926 = vmatprep.subr.bf16.mxu0 %v2205_v3  ;;  %v2402_v61 = vsub.f32 %v2368_v44, %v2956_v56  ;;  %v2404_v62 = vand.u32 4294901760, %v48_v60  ;;  %v197_v63 = vand.u32 4294901760, %v2390_v57  ;;  %v2411_v32 = vsub.f32 %v2376_v47, %v2955_v59  ;;  %1576 = vmatprep.mubr.msk.f32.mxu0 %vm2206_vm1, %v2207_v33  ;;  %p2189_p4 = pnand %p2188_p3, %p2182_p0 }
  0x10   :  { %v204_v31 = vand.u32 4294901760, %v2395_v58  ;;  %1547 = vmatprep.mubr.msk.f32.mxu1 %vm2206_vm1, %v2207_v33  ;;  %v1930_v35 = vpack.c.bf16 %v178_v54, %v171_v50  ;;  %v185_v36 = vand.u32 4294901760, %v184_v46  ;;  %v192_v41 = vand.u32 4294901760, %v191_v55 }
  0x11   :  { %v211_v37 = vand.u32 4294901760, %v2402_v61  ;;  %v198_v42 = vsub.f32 %v2390_v57, %v197_v63  ;;  %v218_v45 = vand.u32 4294901760, %v2411_v32  ;;  %v2423_v48 = vsub.f32 %v48_v60, %v2404_v62 }
  0x12   :  { %1928 = vmatpush3.bf16.msra.mxu0 %v1927_v53  ;;  %v205_v43 = vsub.f32 %v2395_v58, %v204_v31  ;;  %vm42_vm2 = vcmask 818176   ;;  %v21_v53 = vld [vmem:[%s2949_s0] sm:$0xf]  ;;  %v1933_v54 = vpack.c.bf16 %v192_v41, %v185_v36  ;;  %v2434_v55 = vpack.c.bf16 %v54_v5, %v51_v4  ;;  %v659_v41 = vld [vmem:[%s2952_s3 + $0x30] sm:$0xff] }
  0x13   :  { %1929 = vmatprep.subr.bf16.mxu0 %v2205_v3  ;;  %v199_v49 = vand.u32 4294901760, %v198_v42  ;;  %v212_v46 = vsub.f32 %v2402_v61, %v211_v37  ;;  %v219_v50 = vsub.f32 %v2411_v32, %v218_v45  ;;  %v44_v60 = vsel %vm42_vm2, %v21_v53, 0  ;;  %v653_v42 = vld [vmem:[%s2952_s3] sm:$0xff]  ;;  %v660_v53 = vld [vmem:[%s2952_s3 + $0x38] sm:$0xff] }
  0x14   :  { %v206_v59 = vand.u32 4294901760, %v205_v43  ;;  %v225_v51 = vand.u32 4294901760, %v2423_v48  ;;  %1907 = vmatpush3.bf16.msra.mxu1 %v2434_v55  ;;  %v2449_v1 = vpack.c.bf16 %v148_v24, %v141_v23  ;;  %v2455_v4 = vpack.c.bf16 %v162_v27, %v155_v25 }
  0x15   :  { %v213_v56 = vand.u32 4294901760, %v212_v46  ;;  %v220_v52 = vand.u32 4294901760, %v219_v50  ;;  %v2461_v5 = vpack.c.bf16 %v176_v29, %v169_v28  ;;  %1908 = vmatprep.subr.bf16.mxu1 %v2205_v3  ;;  %v2474_v23 = vpack.c.bf16 %v60_v10, %v57_v7  ;;  %v655_v28 = vld [vmem:[%s2952_s3 + $0x10] sm:$0xff] }
  0x16   :  { %1931 = vmatpush3.bf16.msra.mxu0 %v1930_v35  ;;  %v1936_v43 = vpack.c.bf16 %v206_v59, %v199_v49  ;;  %v2467_v59 = vpack.c.bf16 %v190_v38, %v183_v34  ;;  %v2476_v24 = vpack.c.bf16 %v204_v31, %v197_v63  ;;  %v2478_v25 = vpack.c.bf16 %v218_v45, %v211_v37 }
  0x17   :  { %1932 = vmatprep.subr.bf16.mxu0 %v2205_v3  ;;  %v677_v27 = vand.u32 4294901760, %v653_v42  ;;  %v680_v29 = vand.u32 4294901760, %v654_v0  ;;  %v2487_v34 = vand.u32 4294901760, %v44_v60  ;;  %v1939_v6 = vpack.c.bf16 %v220_v52, %v213_v56  ;;  %v657_v52 = vld [vmem:[%s2952_s3 + $0x20] sm:$0xff] }
  0x18   :  { %1910 = vmatpush3.bf16.msra.mxu1 %v2474_v23  ;;  %v226_v7 = vsub.f32 %v2423_v48, %v225_v51  ;;  %v2497_v10 = vpack.c.bf16 %v66_v12, %v63_v11  ;;  %v683_v38 = vand.u32 4294901760, %v655_v28  ;;  %v686_v35 = vand.u32 4294901760, %v656_v2 }
  0x19   :  { %1911 = vmatprep.subr.bf16.mxu1 %v2205_v3  ;;  %v2500_v63 = vsub.f32 %v653_v42, %v677_v27  ;;  %v2502_v31 = vsub.f32 %v654_v0, %v680_v29  ;;  %v2510_v9 = vpack.c.bf16 %v680_v29, %v677_v27  ;;  %v2514_v11 = vsub.f32 %v44_v60, %v2487_v34 }
  0x1a   :  { %1934 = vmatpush3.bf16.msra.mxu0 %v1933_v54  ;;  %v227_v12 = vand.u32 4294901760, %v226_v7  ;;  %v2518_v56 = vsub.f32 %v655_v28, %v683_v38  ;;  %v689_v36 = vand.u32 4294901760, %v657_v52  ;;  %v692_v37 = vand.u32 4294901760, %v658_v8 }
  0x1b   :  { %1935 = vmatprep.subr.bf16.mxu0 %v2205_v3  ;;  %v2527_v45 = vpack.c.bf16 %v72_v22, %v69_v18  ;;  %v770_v49 = vand.u32 4294901760, %v2500_v63  ;;  %v777_v46 = vand.u32 4294901760, %v2502_v31  ;;  %v2531_v50 = vsub.f32 %v656_v2, %v686_v35 }
  0x1c   :  { %1913 = vmatpush3.bf16.msra.mxu1 %v2497_v10  ;;  %v1942_v54 = vpack.c.bf16 %v2295_v16, %v2290_v15  ;;  %v130_v13 = vand.u32 4294901760, %v2514_v11  ;;  %v695_v14 = vand.u32 4294901760, %v659_v41  ;;  %v2541_v18 = vpack.c.bf16 %v686_v35, %v683_v38  ;;  %v2576_v38 = vld [vmem:[%s2952_s3 + $0x40] sm:$0xff] }
  0x1d   :  { %1914 = vmatprep.subr.bf16.mxu1 %v2205_v3  ;;  %v2962_v22 = vand.u32 4294901760, %v2518_v56  ;;  %v2545_v60 = vsub.f32 %v657_v52, %v689_v36  ;;  %v2547_v42 = vsub.f32 %v658_v8, %v692_v37  ;;  %v771_v15 = vsub.f32 %v2500_v63, %v770_v49 }
  0x1e   :  { %1937 = vmatpush3.bf16.msra.mxu0 %v1936_v43  ;;  %v698_v43 = vand.u32 4294901760, %v660_v53  ;;  %v778_v16 = vsub.f32 %v2502_v31, %v777_v46  ;;  %v2961_v0 = vand.u32 4294901760, %v2531_v50  ;;  %v2556_v27 = vpack.c.bf16 %v692_v37, %v689_v36 }
  0x1f   :  { %1938 = vmatprep.subr.bf16.mxu0 %v2205_v3  ;;  %v2965_v28 = vand.u32 4294901760, %v2358_v39  ;;  %v2966_v29 = vand.u32 4294901760, %v2363_v40  ;;  %v131_v7 = vsub.f32 %v2514_v11, %v130_v13  ;;  %v2581_v39 = vld [vmem:[%s2952_s3 + $0x48] sm:$0xff]  ;;  %v2589_v35 = vsub.f32 %v659_v41, %v695_v14 }
  0x20   :  { %1916 = vmatpush3.bf16.msra.mxu1 %v2527_v45  ;;  %v2583_v40 = vpack.c.bf16 %v698_v43, %v695_v14  ;;  %v2591_v52 = vsub.f32 %v660_v53, %v698_v43  ;;  %v772_v8 = vand.u32 4294901760, %v771_v15  ;;  %v785_v36 = vsub.f32 %v2518_v56, %v2962_v22  ;;  %v2613_v15 = vld [vmem:[%s2952_s3 + $0x50] sm:$0xff] }
  0x21   :  { %1917 = vmatprep.subr.bf16.mxu1 %v2205_v3  ;;  %v2564_v2 = vpack.c.bf16 %v2966_v29, %v2965_v28  ;;  %v792_v37 = vsub.f32 %v2531_v50, %v2961_v0  ;;  %v2968_v28 = vand.u32 4294901760, %v2376_v47  ;;  %v701_v53 = vand.u32 4294901760, %v2576_v38 }
  0x22   :  { %1940 = vmatpush3.bf16.msra.mxu0 %v1939_v6  ;;  %v1945_v6 = vpack.c.bf16 %v2306_v19, %v2300_v17  ;;  %v2959_v17 = vand.u32 4294901760, %v2545_v60  ;;  %v2960_v19 = vand.u32 4294901760, %v2547_v42  ;;  %v704_v14 = vand.u32 4294901760, %v2581_v39 }
  0x23   :  { %1574 = vmatprep.subr.mxu0 %v2207_v33  ;;  %v1948_v43 = vpack.c.bf16 %v2316_v21, %v2311_v20  ;;  %v132_v47 = vand.u32 4294901760, %v131_v7  ;;  %v2964_v21 = vand.u32 4294901760, %v2589_v35  ;;  %v2634_v7 = vsub.f32 %v2576_v38, %v701_v53 }
  0x24   :  { %1919 = vmatpush3.bf16.msra.mxu1 %v2564_v2  ;;  %v806_v20 = vsub.f32 %v2547_v42, %v2960_v19  ;;  %v707_v19 = vand.u32 4294901760, %v2613_v15  ;;  %vm1317_vm3 = vcmask 76800  }
  0x25   :  { %1920 = vmatprep.subr.bf16.mxu1 %v2205_v3  ;;  %v813_v22 = vsub.f32 %v2589_v35, %v2964_v21 }
  0x26   :  { %1575 = vmatpush3.msra.mxu0 %v227_v12  ;;  %v779_v12 = vand.u32 4294901760, %v778_v16  ;;  %v799_v16 = vsub.f32 %v2545_v60, %v2959_v17  ;;  %v2639_v17 = vsub.f32 %v2581_v39, %v704_v14 }
  0x27   :  { %1941 = vmatprep.subr.bf16.mxu0 %v2205_v3  ;;  %1577 = vmatmul.mubr.f32.vlgmr.msra.gmra.mrb[0].mxu0 %v2487_v34 }
  0x28   :  { %1943 = vmatpush3.bf16.msra.mxu0 %v1942_v54  ;;  %1605 = vmatprep.mubr.msk.f32.mxu0 %vm2206_vm1, %v2207_v33  ;;  %v2967_v54 = vand.u32 4294901760, %v2368_v44  ;;  %v2618_v44 = vld [vmem:[%s2952_s3 + $0x58] sm:$0xff]  ;;  %v2038_v29 = vpack.c.bf16 %v779_v12, %v772_v8  ;;  %v1951_v8 = vpack.c.bf16 %v2333_v30, %v2325_v26  ;;  %v800_v12 = vand.u32 4294901760, %v799_v16 }
  0x29   :  { %1944 = vmatprep.subr.bf16.mxu0 %v2205_v3  ;;  %v710_v0 = vand.u32 4294901760, %v2618_v44  ;;  %v826_v26 = vand.u32 4294901760, %v2634_v7  ;;  %v833_v30 = vand.u32 4294901760, %v2639_v17 }
  0x2a   :  { %v2604_v41 = vpack.c.bf16 %v2968_v28, %v2967_v54  ;;  %v793_v54 = vand.u32 4294901760, %v792_v37  ;;  %v2963_v28 = vand.u32 4294901760, %v2591_v52  ;;  %v807_v37 = vand.u32 4294901760, %v806_v20 }
  0x2b   :  { %v2664_v16 = vsub.f32 %v2618_v44, %v710_v0  ;;  %v1954_v20 = vpack.c.bf16 %v2395_v58, %v2390_v57  ;;  %v834_v21 = vsub.f32 %v2639_v17, %v833_v30  ;;  %v1957_v58 = vpack.c.bf16 %v2411_v32, %v2402_v61 }
  0x2c   :  { %1946 = vmatpush3.bf16.msra.mxu0 %v1945_v6  ;;  %1922 = vmatpush3.bf16.msra.mxu1 %v2604_v41  ;;  %v786_v6 = vand.u32 4294901760, %v785_v36 }
  0x2d   :  { %1947 = vmatprep.subr.bf16.mxu0 %v2205_v3  ;;  %1545 = vmatprep.subr.mxu1 %v2207_v33  ;;  %v847_v57 = vand.u32 4294901760, %v2664_v16 }
  0x2e   :  { %v2041_v36 = vpack.c.bf16 %v793_v54, %v786_v6  ;;  %v814_v6 = vand.u32 4294901760, %v813_v22 }
  0x30   :  { %1949 = vmatpush3.bf16.msra.mxu0 %v1948_v43  ;;  %1546 = vmatpush3.msra.mxu1 %v2404_v62  ;;  %v820_v43 = vsub.f32 %v2591_v52, %v2963_v28  ;;  %v827_v28 = vsub.f32 %v2634_v7, %v826_v26 }
  0x31   :  { %1950 = vmatprep.subr.bf16.mxu0 %v2205_v3  ;;  %1548 = vmatmul.mubr.f32.vlgmr.msra.gmra.mrb[0].mxu1 %v132_v47  ;;  %v2659_v47 = vsub.f32 %v2613_v15, %v707_v19 }
  0x32   :  { %2037 = vmatprep.subr.bf16.mxu1 %v2205_v3  ;;  %1762 = vmatprep.mubr.msk.f32.mxu1 %vm2206_vm1, %v2207_v33  ;;  %v821_v54 = vand.u32 4294901760, %v820_v43  ;;  %v848_v43 = vsub.f32 %v2664_v16, %v847_v57 }
  0x33   :  { %2039 = vmatpush3.bf16.msra.mxu1 %v2038_v29  ;;  %v2044_v29 = vpack.c.bf16 %v807_v37, %v800_v12  ;;  %v828_v12 = vand.u32 4294901760, %v827_v28 }
  0x34   :  { %1952 = vmatpush3.bf16.msra.mxu0 %v1951_v8  ;;  %2040 = vmatprep.subr.bf16.mxu1 %v2205_v3  ;;  %v840_v8 = vand.u32 4294901760, %v2659_v47  ;;  %v2047_v22 = vpack.c.bf16 %v821_v54, %v814_v6 }
  0x35   :  { %1953 = vmatprep.subr.bf16.mxu0 %v2205_v3 }
  0x36   :  { %v841_v37 = vsub.f32 %v2659_v47, %v840_v8 }
  0x37   :  { %2042 = vmatpush3.bf16.msra.mxu1 %v2041_v36  ;;  %v835_v36 = vand.u32 4294901760, %v834_v21 }
  0x38   :  { %1955 = vmatpush3.bf16.msra.mxu0 %v1954_v20  ;;  %2043 = vmatprep.subr.bf16.mxu1 %v2205_v3  ;;  %v842_v32 = vand.u32 4294901760, %v841_v37  ;;  %v849_v20 = vand.u32 4294901760, %v848_v43  ;;  %v2810_v43 = vpack.c.bf16 %v710_v0, %v707_v19 }
  0x39   :  { %1956 = vmatprep.subr.bf16.mxu0 %v2205_v3  ;;  %v2050_v61 = vpack.c.bf16 %v835_v36, %v828_v12 }
  0x3a   :  { %v2053_v21 = vpack.c.bf16 %v849_v20, %v842_v32 }
  0x3b   :  { %2045 = vmatpush3.bf16.msra.mxu1 %v2044_v29 }
  0x3c   :  { %1958 = vmatpush3.bf16.msra.mxu0 %v1957_v58  ;;  %2046 = vmatprep.subr.bf16.mxu1 %v2205_v3 }
  0x3d   :  { %1603 = vmatprep.subr.mxu0 %v2207_v33 }
  0x3f   :  { %2048 = vmatpush3.bf16.msra.mxu1 %v2047_v22  ;;  %v2802_v22 = vpack.c.bf16 %v704_v14, %v701_v53  ;;  %v1333_v14 = vld [vmem:[%s2951_s2] ss:$0 sm:$0xff] }
  0x40   :  { %1604 = vmatpush3.msra.mxu0 %v2423_v48  ;;  %2049 = vmatprep.subr.bf16.mxu1 %v2205_v3  ;;  %v666_v48 = vld [vmem:[%s2952_s3 + $0x68] sm:$0xff] }
  0x41   :  { %1959 = vmatprep.subr.bf16.mxu0 %v2205_v3  ;;  %1606 = vmatmul.mubr.f32.vlgmr.msra.gmra.mrb[0].mxu0 %v2514_v11 }
  0x42   :  { %1961 = vmatpush3.bf16.msra.mxu0 %v2434_v55  ;;  %1634 = vmatprep.mubr.msk.f32.mxu0 %vm2206_vm1, %v2207_v33 }
  0x43   :  { %1962 = vmatprep.subr.bf16.mxu0 %v2205_v3  ;;  %2051 = vmatpush3.bf16.msra.mxu1 %v2050_v61 }
  0x44   :  { %2052 = vmatprep.subr.bf16.mxu1 %v2205_v3 }
  0x46   :  { %1964 = vmatpush3.bf16.msra.mxu0 %v2474_v23 }
  0x47   :  { %1965 = vmatprep.subr.bf16.mxu0 %v2205_v3  ;;  %2054 = vmatpush3.bf16.msra.mxu1 %v2053_v21  ;;  %v2062_v21 = vpack.c.bf16 %v2502_v31, %v2500_v63  ;;  %v2971_v63 = vand.u32 4294901760, %v2545_v60  ;;  %v2972_v31 = vand.u32 4294901760, %v2547_v42 }
  0x48   :  { %2055 = vmatprep.subr.bf16.mxu1 %v2205_v3 }
  0x4a   :  { %1967 = vmatpush3.bf16.msra.mxu0 %v2497_v10 }
  0x4b   :  { %1968 = vmatprep.subr.bf16.mxu0 %v2205_v3 }
  0x4e   :  { %1970 = vmatpush3.bf16.msra.mxu0 %v2527_v45 }
  0x4f   :  { %1971 = vmatprep.subr.bf16.mxu0 %v2205_v3 }
  0x52   :  { %1973 = vmatpush3.bf16.msra.mxu0 %v2564_v2 }
  0x53   :  { %1974 = vmatprep.subr.bf16.mxu0 %v2205_v3 }
  0x56   :  { %1976 = vmatpush3.bf16.msra.mxu0 %v2604_v41 }
  0x57   :  { %1632 = vmatprep.subr.mxu0 %v2207_v33 }
  0x5a   :  { %1633 = vmatpush3.msra.mxu0 %v2404_v62 }
  0x5b   :  { %1977 = vmatprep.subr.bf16.mxu0 %v2205_v3  ;;  %1635 = vmatmul.mubr.f32.vlgmr.msra.gmra.mrb[0].mxu0 %v130_v13 }
  0x5c   :  { %1979 = vmatpush3.bf16.msra.mxu0 %v2449_v1  ;;  %1663 = vmatprep.mubr.msk.f32.mxu0 %vm2206_vm1, %v2207_v33  ;;  %v716_v1 = vand.u32 4294901760, %v666_v48 }
  0x5d   :  { %1980 = vmatprep.subr.bf16.mxu0 %v2205_v3 }
  0x60   :  { %1982 = vmatpush3.bf16.msra.mxu0 %v2455_v4 }
  0x61   :  { %1983 = vmatprep.subr.bf16.mxu0 %v2205_v3 }
  0x64   :  { %1985 = vmatpush3.bf16.msra.mxu0 %v2461_v5  ;;  %v2754_v5 = vsub.f32 %v666_v48, %v716_v1 }
  0x65   :  { %1986 = vmatprep.subr.bf16.mxu0 %v2205_v3 }
  0x68   :  { %1988 = vmatpush3.bf16.msra.mxu0 %v2467_v59 }
  0x69   :  { %1989 = vmatprep.subr.bf16.mxu0 %v2205_v3 }
  0x6c   :  { %1991 = vmatpush3.bf16.msra.mxu0 %v2476_v24 }
  0x6d   :  { %1992 = vmatprep.subr.bf16.mxu0 %v2205_v3 }
  0x70   :  { %1994 = vmatpush3.bf16.msra.mxu0 %v2478_v25 }
  0x71   :  { %1661 = vmatprep.subr.mxu0 %v2207_v33 }
  0x74   :  { %1662 = vmatpush3.msra.mxu0 %v225_v51  ;;  %v665_v51 = vld [vmem:[%s2952_s3 + $0x60] sm:$0xff] }
  0x75   :  { %1995 = vmatprep.subr.bf16.mxu0 %v2205_v3  ;;  %1664 = vmatmul.mubr.f32.vlgmr.msra.gmra.mrb[0].mxu0 %v2487_v34 }
  0x76   :  { %1997 = vmatpush3.bf16.msra.mxu0 %v2434_v55  ;;  %1692 = vmatprep.mubr.msk.f32.mxu0 %vm2206_vm1, %v2207_v33  ;;  %v713_v55 = vand.u32 4294901760, %v665_v51 }
  0x77   :  { %1998 = vmatprep.subr.bf16.mxu0 %v2205_v3 }
  0x78   :  { %v2752_v4 = vsub.f32 %v665_v51, %v713_v55  ;;  %v2815_v38 = vpack.c.bf16 %v716_v1, %v713_v55  ;;  %v2065_v55 = vpack.c.bf16 %v2531_v50, %v2518_v56 }
  0x7a   :  { %2000 = vmatpush3.bf16.msra.mxu0 %v2474_v23  ;;  %v854_v59 = vand.u32 4294901760, %v2752_v4  ;;  %v861_v23 = vand.u32 4294901760, %v2754_v5 }
  0x7b   :  { %2001 = vmatprep.subr.bf16.mxu0 %v2205_v3 }
  0x7c   :  { %v855_v24 = vsub.f32 %v2752_v4, %v854_v59  ;;  %v862_v25 = vsub.f32 %v2754_v5, %v861_v23 }
  0x7e   :  { %2003 = vmatpush3.bf16.msra.mxu0 %v2497_v10  ;;  %v856_v10 = vand.u32 4294901760, %v855_v24  ;;  %v863_v11 = vand.u32 4294901760, %v862_v25  ;;  %v2068_v25 = vpack.c.bf16 %v2547_v42, %v2545_v60  ;;  %v2125_v60 = vpack.c.bf16 %v847_v57, %v840_v8 }
  0x7f   :  { %2004 = vmatprep.subr.bf16.mxu0 %v2205_v3  ;;  %v2128_v42 = vpack.c.bf16 %v861_v23, %v854_v59 }
  0x82   :  { %2006 = vmatpush3.bf16.msra.mxu0 %v2527_v45  ;;  %v2056_v45 = vpack.c.bf16 %v863_v11, %v856_v10  ;;  %v2071_v11 = vpack.c.bf16 %v2591_v52, %v2589_v35 }
  0x83   :  { %2007 = vmatprep.subr.bf16.mxu0 %v2205_v3 }
  0x84   :  { %2057 = vmatpush3.bf16.msra.mxu1 %v2056_v45  ;;  %v2074_v45 = vpack.c.bf16 %v2639_v17, %v2634_v7 }
  0x85   :  { %2058 = vmatprep.subr.bf16.mxu1 %v2205_v3 }
  0x86   :  { %2009 = vmatpush3.bf16.msra.mxu0 %v2564_v2 }
  0x87   :  { %2010 = vmatprep.subr.bf16.mxu0 %v2205_v3 }
  0x8a   :  { %2012 = vmatpush3.bf16.msra.mxu0 %v2604_v41 }
  0x8b   :  { %1690 = vmatprep.subr.mxu0 %v2207_v33 }
  0x8e   :  { %1691 = vmatpush3.msra.mxu0 %v2404_v62  ;;  %v667_v62 = vld [vmem:[%s2952_s3 + $0x70] sm:$0xff] }
  0x8f   :  { %1693 = vmatmul.mubr.f32.vlgmr.msra.gmra.mrb[0].mxu0 %v2487_v34  ;;  %2013 = vmatprep.subr.bf16.mxu0 %v2205_v3  ;;  %v668_v34 = vld [vmem:[%s2952_s3 + $0x78] sm:$0xff]  ;;  %v719_v13 = vand.u32 4294901760, %v667_v62 }
  0x90   :  { %2015 = vmatpush3.bf16.msra.mxu0 %v2510_v9  ;;  %1727 = vmatprep.mubr.msk.f32.mxu0 %vm2206_vm1, %v2207_v33  ;;  %v722_v2 = vand.u32 4294901760, %v668_v34 }
  0x91   :  { %2016 = vmatprep.subr.bf16.mxu0 %v2205_v3  ;;  %v2786_v41 = vsub.f32 %v667_v62, %v719_v13  ;;  %v2077_v62 = vpack.c.bf16 %v2664_v16, %v2659_v47 }
  0x92   :  { %v2788_v28 = vsub.f32 %v668_v34, %v722_v2  ;;  %v2819_v39 = vpack.c.bf16 %v722_v2, %v719_v13  ;;  %v2080_v34 = vpack.c.bf16 %v2754_v5, %v2752_v4  ;;  %v2110_v13 = vpack.c.bf16 %v777_v46, %v770_v49 }
  0x93   :  { %v868_v29 = vand.u32 4294901760, %v2786_v41  ;;  %v2969_v2 = vand.u32 4294901760, %v2518_v56  ;;  %v2116_v49 = vpack.c.bf16 %v2972_v31, %v2971_v63  ;;  %v2973_v46 = vand.u32 4294901760, %v2589_v35 }
  0x94   :  { %2018 = vmatpush3.bf16.msra.mxu0 %v2541_v18  ;;  %v875_v6 = vand.u32 4294901760, %v2788_v28  ;;  %v2083_v0 = vpack.c.bf16 %v2788_v28, %v2786_v41  ;;  %v2974_v56 = vand.u32 4294901760, %v2591_v52 }
  0x95   :  { %2019 = vmatprep.subr.bf16.mxu0 %v2205_v3  ;;  %v869_v54 = vsub.f32 %v2786_v41, %v868_v29 }
  0x96   :  { %v876_v58 = vsub.f32 %v2788_v28, %v875_v6  ;;  %v2131_v17 = vpack.c.bf16 %v875_v6, %v868_v29 }
  0x97   :  { %v870_v12 = vand.u32 4294901760, %v869_v54  ;;  %v2970_v54 = vand.u32 4294901760, %v2531_v50  ;;  %v2119_v50 = vpack.c.bf16 %v2974_v56, %v2973_v46 }
  0x98   :  { %2021 = vmatpush3.bf16.msra.mxu0 %v2556_v27  ;;  %v877_v36 = vand.u32 4294901760, %v876_v58 }
  0x99   :  { %2022 = vmatprep.subr.bf16.mxu0 %v2205_v3  ;;  %v2113_v58 = vpack.c.bf16 %v2970_v54, %v2969_v2 }
  0x9a   :  { %v2059_v37 = vpack.c.bf16 %v877_v36, %v870_v12  ;;  %v2122_v12 = vpack.c.bf16 %v833_v30, %v826_v26 }
  0x9c   :  { %2024 = vmatpush3.bf16.msra.mxu0 %v2583_v40  ;;  %2060 = vmatpush3.bf16.msra.mxu1 %v2059_v37 }
  0x9d   :  { %2025 = vmatprep.subr.bf16.mxu0 %v2205_v3  ;;  %2061 = vmatprep.subr.bf16.mxu1 %v2205_v3 }
  0xa0   :  { %2027 = vmatpush3.bf16.msra.mxu0 %v2802_v22 }
  0xa1   :  { %2028 = vmatprep.subr.bf16.mxu0 %v2205_v3 }
  0xa4   :  { %2030 = vmatpush3.bf16.msra.mxu0 %v2810_v43 }
  0xa5   :  { %2031 = vmatprep.subr.bf16.mxu0 %v2205_v3 }
  0xa8   :  { %2033 = vmatpush3.bf16.msra.mxu0 %v2815_v38 }
  0xa9   :  { %2034 = vmatprep.subr.bf16.mxu0 %v2205_v3 }
  0xac   :  { %2036 = vmatpush3.bf16.msra.mxu0 %v2819_v39 }
 0x104   :  { %v134_v19 = vpop.f32.mrb[0].mxu1 }
 0x105   :  { %v1549_v53 = vpop.f32.mrb[1].mxu1  ;;  %v135_v15 = vadd.f32 %v1333_v14, %v134_v19 }
 0x162   :  { %v648_v44 = vpop.f32.mrb[0].mxu0 }
 0x163   :  { %v2158_v61 = vadd.f32 %v648_v44, %v135_v15  ;;  %v1694_v32 = vpop.f32.mrb[1].mxu0 }
 0x165   :  { %v652_v20 = vmax.f32 %v2158_v61, 0.0 }
 0x167   :  { %v2829_v51 = vand.u32 4294901760, %v652_v20 }
 0x169   :  { %v758_v48 = vsub.f32 %v652_v20, %v2829_v51  ;;  %1763 = vmatmul.mubr.f32.vlgmr.msra.gmra.mrb[2].mxu1 %v2829_v51 }
 0x16a   :  { %2063 = vmatpush3.bf16.msra.mxu1 %v2062_v21  ;;  %1797 = vmatprep.mubr.msk.f32.mxu1 %vm2206_vm1, %v2207_v33 }
 0x16b   :  { %v759_v1 = vand.u32 4294901760, %v758_v48  ;;  %2064 = vmatprep.subr.bf16.mxu1 %v2205_v3 }
 0x16d   :  { %v760_v24 = vsub.f32 %v758_v48, %v759_v1 }
 0x16e   :  { %2066 = vmatpush3.bf16.msra.mxu1 %v2065_v55 }
 0x16f   :  { %2067 = vmatprep.subr.bf16.mxu1 %v2205_v3  ;;  %v761_v10 = vand.u32 4294901760, %v760_v24 }
 0x171   :  { %1728 = vmatmul.mubr.f32.vlgmr.msra.gmra.mrb[2].mxu0 %v761_v10 }
 0x172   :  { %2069 = vmatpush3.bf16.msra.mxu1 %v2068_v25 }
 0x173   :  { %2070 = vmatprep.subr.bf16.mxu1 %v2205_v3 }
 0x176   :  { %2072 = vmatpush3.bf16.msra.mxu1 %v2071_v11 }
 0x177   :  { %2073 = vmatprep.subr.bf16.mxu1 %v2205_v3 }
 0x17a   :  { %2075 = vmatpush3.bf16.msra.mxu1 %v2074_v45 }
 0x17b   :  { %2076 = vmatprep.subr.bf16.mxu1 %v2205_v3 }
 0x17e   :  { %2078 = vmatpush3.bf16.msra.mxu1 %v2077_v62 }
 0x17f   :  { %2079 = vmatprep.subr.bf16.mxu1 %v2205_v3 }
 0x182   :  { %2081 = vmatpush3.bf16.msra.mxu1 %v2080_v34 }
 0x183   :  { %2082 = vmatprep.subr.bf16.mxu1 %v2205_v3 }
 0x186   :  { %2084 = vmatpush3.bf16.msra.mxu1 %v2083_v0 }
 0x187   :  { %2085 = vmatprep.subr.bf16.mxu1 %v2205_v3 }
 0x189   :  { %1798 = vmatmul.mubr.f32.vlgmr.msra.gmra.mrb[2].mxu1 %v758_v48 }
 0x18a   :  { %2087 = vmatpush3.bf16.msra.mxu1 %v2510_v9  ;;  %1832 = vmatprep.mubr.msk.f32.mxu1 %vm2206_vm1, %v2207_v33 }
 0x18b   :  { %2088 = vmatprep.subr.bf16.mxu1 %v2205_v3 }
 0x18e   :  { %2090 = vmatpush3.bf16.msra.mxu1 %v2541_v18 }
 0x18f   :  { %2091 = vmatprep.subr.bf16.mxu1 %v2205_v3 }
 0x192   :  { %2093 = vmatpush3.bf16.msra.mxu1 %v2556_v27 }
 0x193   :  { %2094 = vmatprep.subr.bf16.mxu1 %v2205_v3 }
 0x196   :  { %2096 = vmatpush3.bf16.msra.mxu1 %v2583_v40 }
 0x197   :  { %2097 = vmatprep.subr.bf16.mxu1 %v2205_v3 }
 0x19a   :  { %2099 = vmatpush3.bf16.msra.mxu1 %v2802_v22 }
 0x19b   :  { %2100 = vmatprep.subr.bf16.mxu1 %v2205_v3 }
 0x19e   :  { %2102 = vmatpush3.bf16.msra.mxu1 %v2810_v43 }
 0x19f   :  { %2103 = vmatprep.subr.bf16.mxu1 %v2205_v3 }
 0x1a2   :  { %2105 = vmatpush3.bf16.msra.mxu1 %v2815_v38 }
 0x1a3   :  { %2106 = vmatprep.subr.bf16.mxu1 %v2205_v3 }
 0x1a6   :  { %2108 = vmatpush3.bf16.msra.mxu1 %v2819_v39 }
 0x1a7   :  { %2109 = vmatprep.subr.bf16.mxu1 %v2205_v3 }
 0x1a9   :  { %1833 = vmatmul.mubr.f32.vlgmr.msra.gmra.mrb[2].mxu1 %v759_v1 }
 0x1aa   :  { %2111 = vmatpush3.bf16.msra.mxu1 %v2110_v13  ;;  %1867 = vmatprep.mubr.msk.f32.mxu1 %vm2206_vm1, %v2207_v33 }
 0x1ab   :  { %2112 = vmatprep.subr.bf16.mxu1 %v2205_v3 }
 0x1ae   :  { %2114 = vmatpush3.bf16.msra.mxu1 %v2113_v58 }
 0x1af   :  { %2115 = vmatprep.subr.bf16.mxu1 %v2205_v3 }
 0x1b2   :  { %2117 = vmatpush3.bf16.msra.mxu1 %v2116_v49 }
 0x1b3   :  { %2118 = vmatprep.subr.bf16.mxu1 %v2205_v3 }
 0x1b6   :  { %2120 = vmatpush3.bf16.msra.mxu1 %v2119_v50 }
 0x1b7   :  { %2121 = vmatprep.subr.bf16.mxu1 %v2205_v3 }
 0x1ba   :  { %2123 = vmatpush3.bf16.msra.mxu1 %v2122_v12 }
 0x1bb   :  { %2124 = vmatprep.subr.bf16.mxu1 %v2205_v3 }
 0x1be   :  { %2126 = vmatpush3.bf16.msra.mxu1 %v2125_v60 }
 0x1bf   :  { %2127 = vmatprep.subr.bf16.mxu1 %v2205_v3 }
 0x1c2   :  { %2129 = vmatpush3.bf16.msra.mxu1 %v2128_v42 }
 0x1c3   :  { %2130 = vmatprep.subr.bf16.mxu1 %v2205_v3 }
 0x1c6   :  { %2132 = vmatpush3.bf16.msra.mxu1 %v2131_v17 }
 0x1c7   :  { %2133 = vmatprep.subr.bf16.mxu1 %v2205_v3 }
 0x1c9   :  { %1868 = vmatmul.mubr.f32.vlgmr.msra.gmra.mrb[2].mxu1 %v2829_v51 }
 0x1ca   :  { %2135 = vmatpush3.bf16.msra.mxu1 %v2510_v9  ;;  %1902 = vmatprep.mubr.msk.f32.mxu1 %vm2206_vm1, %v2207_v33 }
 0x1cb   :  { %2136 = vmatprep.subr.bf16.mxu1 %v2205_v3 }
 0x1ce   :  { %2138 = vmatpush3.bf16.msra.mxu1 %v2541_v18  ;;  %v1334_v18 = vld [vmem:[%s2953_s4] ss:$0 sm:$0xff] }
 0x1cf   :  { %2139 = vmatprep.subr.bf16.mxu1 %v2205_v3 }
 0x1d2   :  { %2141 = vmatpush3.bf16.msra.mxu1 %v2556_v27 }
 0x1d3   :  { %2142 = vmatprep.subr.bf16.mxu1 %v2205_v3 }
 0x1d6   :  { %2144 = vmatpush3.bf16.msra.mxu1 %v2583_v40 }
 0x1d7   :  { %2145 = vmatprep.subr.bf16.mxu1 %v2205_v3 }
 0x1da   :  { %2147 = vmatpush3.bf16.msra.mxu1 %v2802_v22 }
 0x1db   :  { %2148 = vmatprep.subr.bf16.mxu1 %v2205_v3 }
 0x1de   :  { %2150 = vmatpush3.bf16.msra.mxu1 %v2810_v43 }
 0x1df   :  { %2151 = vmatprep.subr.bf16.mxu1 %v2205_v3 }
 0x1e2   :  { %2153 = vmatpush3.bf16.msra.mxu1 %v2815_v38 }
 0x1e3   :  { %2154 = vmatprep.subr.bf16.mxu1 %v2205_v3 }
 0x1e6   :  { %2156 = vmatpush3.bf16.msra.mxu1 %v2819_v39 }
 0x1e9   :  { %1903 = vmatmul.mubr.f32.vlgmr.msra.gmra.mrb[2].mxu1 %v2829_v51 }
 0x244   :  { %v763_v33 = vpop.f32.mrb[2].mxu0 }
 0x245   :  { %v1729_v9 = vpop.f32.mrb[3].mxu0  ;;  %v764_v27 = vadd.f32 %v1334_v18, %v763_v33 }
 0x2bc   :  { %v1313_v40 = vpop.f32.mrb[2].mxu1 }
 0x2bd   :  { %v2160_v35 = vadd.f32 %v1313_v40, %v764_v27  ;;  %v1904_v52 = vpop.f32.mrb[3].mxu1 }
 0x2bf   :  { %1318 = vst.msk [vmem:[#allocation2] sm:$0xf] %vm1317_vm3, %v2160_v35 }
 0x2c0   :  { %2192 = shalt.err (!%p2189_p4)
}
 0x2c1   :  { %s2193_s4 = scalar_lea.hbm %s2954_s5, 64 }
 0x2c2   :  { %p2194_p5 = scmp.ne.s32.totalorder %s2954_s5, %s2193_s4  ;;  %p2197_p6 = scmp.lt.u32.totalorder %s2193_s4, %s2954_s5 }
 0x2c4   :  { %p2199_p7 = pnand %p2197_p6, %p2194_p5 }
 0x2c6   :  { %2202 = shalt.err (!%p2199_p7)
}
 0x2c7   :  { %1328 = dma.vmem_to_hbm [thread:$0]  %s1326_s27, 64, %s2954_s5, [#allocation3]  }
 0x2c8   :  { %2203 = dma.done.wait [#allocation3], 64  }
 0x2c9   :  { %2204 = vsyncadd [#allocation3], 4294967232 }
 0x2ca   :  { %1332 = vsyncpa [#allocation3], 1 }

</bundles_post_ra>
